<compile_context>
chip_gen: v7x
topology: tpu7x:2x2x1
jax: 0.10.0
libtpu: 0.0.40
codegen_flags: <defaults>
</compile_context>

<pallas_src>
import jax
import jax.numpy as jnp
from jax.experimental import pallas as pl
from jax.experimental.pallas import tpu as pltpu


_VMEM_TILE_BUDGET = 16 * 1024 * 1024  # bytes for double-buffered X + out tiles


def _round_up(x, m):
    return ((x + m - 1) // m) * m


def _pick_row_tile(rows, pref_rows, row_bytes):
    """Sublane-dim row tile.

    Returns either a multiple of 8 (tiled case) or the full extent `rows`
    (single-block case).  Caps the tile so 2x(X tile) + 2x(lane-padded out
    tile) stays within _VMEM_TILE_BUDGET, and for large inputs prefers >=8
    grid steps (>=4 per TC on v7x megacore) while keeping tiles >= 2048 rows.
    """
    cap = max(8, (_VMEM_TILE_BUDGET // (2 * row_bytes)) // 8 * 8)
    pref = max(8, min(int(pref_rows), cap) // 8 * 8)
    if rows <= pref:
        return rows
    eighth = _round_up(pl.cdiv(rows, 8), 8)
    return max(min(pref, eighth), min(pref, 2048))


def _linreg_kernel(x_ref, w_ref, b_ref, o_ref):
    # One (tr, L) row tile of (packed) X against the resident (L, P) weight.
    y = jnp.dot(x_ref[...], w_ref[...], preferred_element_type=jnp.float32)
    o_ref[...] = (y + b_ref[0, 0]).astype(o_ref.dtype)


def linear_regression_forward(x, w, b, *, tile_rows=32768, force_pallas=False):
    """forward(X) = X @ w + b.  x: (N, D), w: (D, 1), b: (1,) -> (N, 1)."""
    N, D = x.shape
    out_dtype = jnp.promote_types(x.dtype, w.dtype)
    in_itemsize = jnp.dtype(x.dtype).itemsize
    out_itemsize = jnp.dtype(out_dtype).itemsize

    # Tiny-batch dispatch: pallas_call overhead dominates below a few K rows.
    if N < 1024 and not force_pallas:
        y = jnp.dot(x, w, preferred_element_type=jnp.float32) + b.astype(jnp.float32)
        return y.astype(out_dtype)

    # bf16/f16 inputs halve per-tile bytes; double the row tile so the fixed
    # ~0.35 us grid-step overhead stays amortized.
    tile_rows = int(tile_rows) * (2 if in_itemsize == 2 else 1)

    # Lane-dense packing: X (N, D) viewed as (N/pack, pack*D) against a
    # block-diagonal weight (pack*D, pack).  (Note: zero-weight lanes hit any
    # Inf/NaN in X -> NaN; fine for finite inputs.)  Ragged N falls back to the
    # direct layout, still without an HBM pad copy.
    pack = 128 // D if (0 < D <= 128 and 128 % D == 0) else 1
    if pack > 1 and N % pack != 0:
        pack = 1
    rows, lanes = N // pack, D * pack

    x_v = x.reshape(rows, lanes)                   # contiguous reinterpret, no copy
    if pack > 1:
        # Block-diagonal weight: Wbd[p*D + d, p] = w[d, 0].
        w_v = jnp.kron(jnp.eye(pack, dtype=w.dtype), w)
    else:
        w_v = w
    b2d = b.reshape(1, 1).astype(jnp.float32)      # scalar bias lives in SMEM

    # Row tile (packed rows): 8-aligned, VMEM-budgeted (lane-padded buffers).
    row_bytes = _round_up(lanes, 128) * in_itemsize + 128 * out_itemsize
    tr = _pick_row_tile(rows, max(8, tile_rows) // pack, row_bytes)
    grid = (pl.cdiv(rows, tr),)

    out = pl.pallas_call(
        _linreg_kernel,
        out_shape=jax.ShapeDtypeStruct((rows, pack), out_dtype),
        grid=grid,
        in_specs=[
            # X: row-tiled, auto double-buffered.
            # TODO(synk): on v7x, if profiling shows exposed DMA at tile
            #             boundaries, add pipeline_mode=pl.Buffered(3) here.
            pl.BlockSpec((tr, lanes), lambda i: (i, 0)),
            pl.BlockSpec((lanes, pack), lambda i: (0, 0)),   # w: resident
            pl.BlockSpec(memory_space=pltpu.SMEM),           # b: SMEM scalar
        ],
        out_specs=pl.BlockSpec((tr, pack), lambda i: (i, 0)),
        compiler_params=pltpu.CompilerParams(
            dimension_semantics=("parallel",),    # shard row tiles across TCs (v7x)
            vmem_limit_bytes=32 * 1024 * 1024,    # covers v5e's 16 MiB scoped default
        ),
        cost_estimate=pl.CostEstimate(
            flops=2 * N * D,
            transcendentals=0,
            bytes_accessed=N * D * in_itemsize
            + lanes * pack * jnp.dtype(w.dtype).itemsize
            + N * out_itemsize,
        ),
    )(x_v, w_v, b2d)

    # (rows, pack) -> (N, 1) is a free contiguous reinterpret.
    return out.reshape(N, 1)


if __name__ == "__main__":
    # Small shapes consistent with the module: num_inputs=32, batch=8.
    num_inputs = 32
    batch = 8
    sigma = 0.01

    key = jax.random.PRNGKey(0)
    k_w, k_x, k_x2, k_x3 = jax.random.split(key, 4)

    # Deterministic parameter init mirroring __init__:
    #   w = normal(0, sigma, (num_inputs, 1)); b = zeros(1)
    w = sigma * jax.random.normal(k_w, (num_inputs, 1), dtype=jnp.float32)
    b = jnp.zeros((1,), dtype=jnp.float32)

    # 1) Small demo batch -- force the Pallas path so the kernel is exercised.
    x = jax.random.normal(k_x, (batch, num_inputs), dtype=jnp.float32)
    y = jax.block_until_ready(linear_regression_forward(x, w, b, force_pallas=True))
    assert y.shape == (batch, 1)
    assert jnp.allclose(y, x @ w + b, atol=1e-5, rtol=1e-5)

    # 2) N divisible by 4 -- lane-dense packed path with a multi-tile grid.
    n2 = 2048
    x2 = jax.random.normal(k_x2, (n2, num_inputs), dtype=jnp.float32)
    y2 = jax.block_until_ready(
        linear_regression_forward(x2, w, b, tile_rows=512, force_pallas=True)
    )
    assert y2.shape == (n2, 1)
    assert jnp.allclose(y2, x2 @ w + b, atol=1e-5, rtol=1e-5)

    # 3) Ragged N -- unpacked fallback, multi-tile grid with a masked partial
    #    last block (no HBM pad copy, no output slice).
    n3 = 2053
    x3 = jax.random.normal(k_x3, (n3, num_inputs), dtype=jnp.float32)
    y3 = jax.block_until_ready(
        linear_regression_forward(x3, w, b, tile_rows=512, force_pallas=True)
    )
    assert y3.shape == (n3, 1)
    assert jnp.allclose(y3, x3 @ w + b, atol=1e-5, rtol=1e-5)

    print("KERNEL_OK")
</pallas_src>

<mosaic_0001>
module attributes {stable_mosaic.version = 11 : i64} {
  func.func @_linreg_kernel(%arg0: i32, %arg1: memref<2x128xf32, #tpu.memory_space<vmem>>, %arg2: memref<128x4xf32, #tpu.memory_space<vmem>>, %arg3: memref<1x1xf32, #tpu.memory_space<smem>>, %arg4: memref<2x4xf32, #tpu.memory_space<vmem>>) attributes {dimension_semantics = [#tpu.dimension_semantics<parallel>], iteration_bounds = array<i64: 1>, scalar_prefetch = 0 : i64, scratch_operands = 0 : i64, tpu.core_type = #tpu.core_type<tc>, window_params = [{transform_indices = @transform_0, window_bounds = array<i64: 2, 128>}, {pipeline_mode = #tpu.pipeline_mode<synchronous>, transform_indices = @transform_1, window_bounds = array<i64: 128, 4>}, {transform_indices = @transform_2, window_bounds = array<i64: 1, 1>}, {transform_indices = @transform_3, window_bounds = array<i64: 2, 4>}]} {
    %c0 = arith.constant 0 : index
    %c0_0 = arith.constant 0 : index
    %0 = vector.load %arg1[%c0, %c0_0] : memref<2x128xf32, #tpu.memory_space<vmem>>, vector<2x128xf32>
    %c0_1 = arith.constant 0 : index
    %c0_2 = arith.constant 0 : index
    %1 = vector.load %arg2[%c0_1, %c0_2] : memref<128x4xf32, #tpu.memory_space<vmem>>, vector<128x4xf32>
    %cst = arith.constant dense<0.000000e+00> : vector<2x4xf32>
    %2 = tpu.matmul %0, %1, %cst {dimension_numbers = #tpu.dot_dimension_numbers<[1], [0], [0], [1], [0, 0, 1, 1], [], []>} : vector<2x128xf32>, vector<128x4xf32>, vector<2x4xf32> -> vector<2x4xf32>
    %c0_3 = arith.constant 0 : index
    %c0_4 = arith.constant 0 : index
    %3 = memref.load %arg3[%c0_3, %c0_4] : memref<1x1xf32, #tpu.memory_space<smem>>
    %4 = vector.broadcast %3 : f32 to vector<2x4xf32>
    %5 = arith.addf %2, %4 : vector<2x4xf32>
    %c0_5 = arith.constant 0 : index
    %c0_6 = arith.constant 0 : index
    %6 = vector.load %arg4[%c0_5, %c0_6] : memref<2x4xf32, #tpu.memory_space<vmem>>, vector<2x4xf32>
    tpu.vector_store %arg4[%c0_5, %c0_6], %5 {strides = array<i32>} : memref<2x4xf32, #tpu.memory_space<vmem>>, vector<2x4xf32>,
    return
  }
  func.func @transform_0(%arg0: i32) -> (i32, i32) {
    %c0_i32 = arith.constant 0 : i32
    %c0_i32_0 = arith.constant 0 : i32
    return %arg0, %c0_i32 : i32, i32
  }
  func.func @transform_1(%arg0: i32) -> (i32, i32) {
    %c0_i32 = arith.constant 0 : i32
    %c0_i32_0 = arith.constant 0 : i32
    %c0_i32_1 = arith.constant 0 : i32
    return %c0_i32, %c0_i32_0 : i32, i32
  }
  func.func @transform_2(%arg0: i32) -> (i32, i32) {
    %c0_i32 = arith.constant 0 : i32
    %c0_i32_0 = arith.constant 0 : i32
    %c0_i32_1 = arith.constant 0 : i32
    return %c0_i32, %c0_i32_0 : i32, i32
  }
  func.func @transform_3(%arg0: i32) -> (i32, i32) {
    %c0_i32 = arith.constant 0 : i32
    %c0_i32_0 = arith.constant 0 : i32
    return %arg0, %c0_i32 : i32, i32
  }
}

</mosaic_0001>

<bundles_post_ra>
// kernel: tpu_custom_call.1
= control target key start
LH: loop header
LB: loop body
LE: loop exit
PB: predicated region body
PF: predicated region fallthrough
CT: control target
= control target key end

     0   :  { %v225_v3 = vmov 0.0|0.0   ;;  %vm226_vm0 = vmmov 0   ;;  %v227_v6 = vmov 0.0   ;;  %s315_s0 = inlined_call_operand.vmem [shape: f32[2,128], index: 0, kind: input, shape index: {}]   ;;  %s316_s1 = inlined_call_operand.vmem [shape: f32[128,4], index: 1, kind: input, shape index: {}]   ;;  %s317_s2 = inlined_call_operand.<no memory space> [shape: f32[1,1], index: 2, kind: input, shape index: {}]   ;;  %s318_s3 = inlined_call_operand.hbm [shape: f32[2,4], index: 3, kind: output, shape index: {}]  }
   0x1   :  { %v17_v0 = vld [vmem:[%s316_s1] sm:$0xff]  ;;  %v18_v1 = vld [vmem:[%s316_s1 + $0x8] sm:$0xff]  ;;  %v19_v2 = vld [vmem:[%s316_s1 + $0x10] sm:$0xff]  ;;  %173 = vmatprep.subr.bf16.mxu0 %v225_v3  ;;  %170 = vmatprep.mubr.msk.f32.mxu0 %vm226_vm0, %v227_v6 }
   0x2   :  { %v174_v4 = vpack.c.bf16 %v18_v1, %v17_v0  ;;  %v20_v5 = vld [vmem:[%s316_s1 + $0x18] sm:$0xff]  ;;  %v21_v8 = vld [vmem:[%s316_s1 + $0x20] sm:$0xff]  ;;  %v22_v9 = vld [vmem:[%s316_s1 + $0x28] sm:$0xff] }
   0x3   :  { %v177_v7 = vpack.c.bf16 %v20_v5, %v19_v2 }
   0x4   :  { %175 = vmatpush3.bf16.msra.mxu0 %v174_v4 }
   0x5   :  { %176 = vmatprep.subr.bf16.mxu0 %v225_v3 }
   0x6   :  { %9 = vsyncpa [#allocation4], 0  ;;  %v180_v10 = vpack.c.bf16 %v22_v9, %v21_v8  ;;  %v23_v11 = vld [vmem:[%s316_s1 + $0x30] sm:$0xff]  ;;  %v24_v12 = vld [vmem:[%s316_s1 + $0x38] sm:$0xff]  ;;  %v34_v27 = vstv %s317_s2  ;;  %s228_s21 = smov [#allocation3]   ;;  %vm105_vm1 = vcmask 25600  }
   0x7   :  { %v183_v13 = vpack.c.bf16 %v24_v12, %v23_v11  ;;  %v25_v14 = vld [vmem:[%s316_s1 + $0x40] sm:$0xff]  ;;  %v26_v15 = vld [vmem:[%s316_s1 + $0x48] sm:$0xff]  ;;  %v27_v17 = vld [vmem:[%s316_s1 + $0x50] sm:$0xff]  ;;  %s113_s22 = sshll.u32 %s228_s21, 4  ;;  %s114_s22 = int_to_ptr.vmem [resolvable:$true] %s113_s22 }
   0x8   :  { %178 = vmatpush3.bf16.msra.mxu0 %v177_v7  ;;  %v186_v16 = vpack.c.bf16 %v26_v15, %v25_v14  ;;  %v28_v18 = vld [vmem:[%s316_s1 + $0x58] sm:$0xff]  ;;  %v29_v20 = vld [vmem:[%s316_s1 + $0x60] sm:$0xff]  ;;  %v30_v21 = vld [vmem:[%s316_s1 + $0x68] sm:$0xff]  ;;  %p206_p1 = scmp.lt.s32.totalorder %s114_s22, %s114_s22 }
   0x9   :  { %179 = vmatprep.subr.bf16.mxu0 %v225_v3  ;;  %v189_v19 = vpack.c.bf16 %v28_v18, %v27_v17  ;;  %v192_v22 = vpack.c.bf16 %v30_v21, %v29_v20  ;;  %v31_v23 = vld [vmem:[%s316_s1 + $0x70] sm:$0xff]  ;;  %v32_v24 = vld [vmem:[%s316_s1 + $0x78] sm:$0xff]  ;;  %v16_v26 = vld [vmem:[%s315_s0] sm:$0x3]  ;;  %s201_s1 = scalar_lea.vmem %s114_s22, 32 }
   0xa   :  { %v195_v25 = vpack.c.bf16 %v32_v24, %v31_v23  ;;  %p202_p0 = scmp.ne.s32.totalorder %s114_s22, %s201_s1  ;;  %p207_p2 = scmp.lt.s32.totalorder %s201_s1, %s201_s1 }
   0xc   :  { %181 = vmatpush3.bf16.msra.mxu0 %v180_v10  ;;  %p208_p3 = por %p207_p2, %p206_p1 }
   0xd   :  { %182 = vmatprep.subr.bf16.mxu0 %v225_v3 }
   0xe   :  { %p209_p4 = pnand %p208_p3, %p202_p0 }
  0x10   :  { %184 = vmatpush3.bf16.msra.mxu0 %v183_v13 }
  0x11   :  { %185 = vmatprep.subr.bf16.mxu0 %v225_v3 }
  0x14   :  { %187 = vmatpush3.bf16.msra.mxu0 %v186_v16 }
  0x15   :  { %188 = vmatprep.subr.bf16.mxu0 %v225_v3 }
  0x18   :  { %190 = vmatpush3.bf16.msra.mxu0 %v189_v19 }
  0x19   :  { %191 = vmatprep.subr.bf16.mxu0 %v225_v3 }
  0x1c   :  { %193 = vmatpush3.bf16.msra.mxu0 %v192_v22 }
  0x1d   :  { %194 = vmatprep.subr.bf16.mxu0 %v225_v3 }
  0x20   :  { %196 = vmatpush3.bf16.msra.mxu0 %v195_v25 }
  0x23   :  { %171 = vmatmul.mubr.f32.vlgmr.msra.gmra.mrb[0].mxu0 %v16_v26 }
  0xf6   :  { %v101_v28 = vpop.f32.mrb[0].mxu0 }
  0xf7   :  { %v102_v29 = vadd.f32 %v101_v28, %v34_v27  ;;  %v172_v30 = vpop.f32.mrb[1].mxu0 }
  0xf9   :  { %106 = vst.msk [vmem:[#allocation3] sm:$0x3] %vm105_vm1, %v102_v29 }
  0xfa   :  { %212 = shalt.err (!%p209_p4)
}
  0xfb   :  { %s213_s24 = scalar_lea.hbm %s318_s3, 32 }
  0xfc   :  { %p214_p5 = scmp.ne.s32.totalorder %s318_s3, %s213_s24  ;;  %p217_p6 = scmp.lt.u32.totalorder %s213_s24, %s318_s3 }
  0xfe   :  { %p219_p7 = pnand %p217_p6, %p214_p5 }
 0x100   :  { %222 = shalt.err (!%p219_p7)
}
 0x101   :  { %116 = dma.vmem_to_hbm [thread:$0]  %s114_s22, 32, %s318_s3, [#allocation4]  }
 0x102   :  { %223 = dma.done.wait [#allocation4], 32  }
 0x103   :  { %224 = vsyncadd [#allocation4], 4294967264 }
 0x104   :  { %120 = vsyncpa [#allocation4], 1 }

</bundles_post_ra>
